<compile_context>
chip_gen: v7x
topology: tpu7x:2x2x1
jax: 0.10.0
libtpu: 0.0.40
codegen_flags: <defaults>
</compile_context>

<pallas_src>
import functools

import jax
import jax.numpy as jnp
from jax.experimental import pallas as pl
from jax.experimental.pallas import tpu as pltpu


# ----------------------------------------------------------------------------
# Kernel A: per (batch, HW-tile)
#   xcat_ref : (1, Csum, THW) bf16   concatenated upsampled features
#   wf_ref   : (C, Csum)      bf16   fuse 1x1 conv weight (BN folded)
#   bf_ref   : (C, 1)         f32    fuse bias (BN folded)
#   w2_ref   : (2C, C)        bf16   [g | phi] weights (BN folded)
#   b2_ref   : (2C, 1)        f32    [g | phi] biases
#   xf_ref   : (1, C, THW)    bf16   fused features (residual), lane-dense
#   m_ref    : (1, C, C)      f32    Gram accumulator M = sum_k g[:,k] phi[:,k]^T
# ----------------------------------------------------------------------------
def nl_project_kernel(xcat_ref, wf_ref, bf_ref, w2_ref, b2_ref,
                      xf_ref, m_ref, *, hw, thw, needs_mask):
    t = pl.program_id(1)
    xcat = xcat_ref[0]                                      # (Csum, THW) bf16

    # fuse: 1x1 conv (+ folded BN) + ReLU, f32 accumulation
    xf = jnp.dot(wf_ref[...], xcat,
                 preferred_element_type=jnp.float32) + bf_ref[...]
    xf = jnp.maximum(xf, 0.0)                               # (C, THW) f32
    xf_bf = xf.astype(jnp.bfloat16)
    xf_ref[0] = xf_bf                                       # bf16 intermediate

    # fused g / phi projection: one (2C, C) x (C, THW) matmul
    proj = jnp.dot(w2_ref[...], xf_bf,
                   preferred_element_type=jnp.float32) + b2_ref[...]
    c = xf.shape[0]
    g_x = proj[0:c]                                         # (C, THW)
    phi_x = proj[c:2 * c]                                   # (C, THW)

    if needs_mask:
        # zero padded HW columns out of the Gram accumulation (exactness)
        col = jax.lax.broadcasted_iota(jnp.int32, (1, thw), 1) + t * thw
        phi_x = jnp.where(col < hw, phi_x, 0.0)

    # Gram matrix partial: M_tile = g_tile @ phi_tile^T (contract lane axis)
    m_part = jax.lax.dot_general(
        g_x.astype(jnp.bfloat16), phi_x.astype(jnp.bfloat16),
        (((1,), (1,)), ((), ())), preferred_element_type=jnp.float32)

    @pl.when(t == 0)
    def _():
        m_ref[0] = jnp.zeros_like(m_part)

    m_ref[0] = m_ref[0] + m_part


# ----------------------------------------------------------------------------
# Kernel B: per (batch, HW-tile)
#   res_tile = M_eff @ xf_tile + b_eff + xf_tile     (lane-dense (C, THW) out)
#   me_ref : (1, C, C)   bf16   M_eff = (M @ W_theta)/HW   (pre-cast)
#   be_ref : (1, C, 1)   f32    b_eff = (M @ b_theta)/HW
#   xf_ref : (1, C, THW) bf16
# ----------------------------------------------------------------------------
def nl_apply_kernel(me_ref, be_ref, xf_ref, o_ref):
    xf = xf_ref[0]                                          # (C, THW) bf16
    res = jnp.dot(me_ref[0], xf, preferred_element_type=jnp.float32)
    res = res + be_ref[0] + xf.astype(jnp.float32)
    o_ref[0] = res.astype(o_ref.dtype)


# ----------------------------------------------------------------------------
# VMEM budget / tile selection (generation-aware; v7x has 64 MiB per TC)
# ----------------------------------------------------------------------------
_TILE_CANDIDATES = (2048, 1024, 512, 256, 128)


def _vmem_limit_bytes():
    try:
        cap = int(pltpu.get_tpu_info().vmem_capacity_bytes)
    except Exception:
        cap = 64 * 1024 * 1024          # conservative: smallest per-TC VMEM
    # leave headroom for compiler-internal scratch
    return max(16 * 1024 * 1024, min((cap * 3) // 4, 100 * 1024 * 1024))


def _pick_hw_tile(hw, csum, c, budget):
    """Pick a 128-multiple lane tile that fits the VMEM budget; pad HW to it."""
    hw128 = ((hw + 127) // 128) * 128
    thw = 128
    for t in _TILE_CANDIDATES:
        if t > hw128:
            continue
        # per-step estimate: double-buffered xcat-in (bf16) + xf-out (bf16),
        # resident M (f32), weights, and f32 projection scratch
        need = (2 * (csum * t * 2) + 2 * (c * t * 2) + 2 * (c * c * 4)
                + 2 * (c * csum * 2 + 2 * c * c * 2 + 3 * c * 4)
                + 4 * c * t * 4)
        if need <= budget:
            thw = t
            break
    hw_pad = ((hw + thw - 1) // thw) * thw
    return thw, hw_pad


# ----------------------------------------------------------------------------
# Parameter construction / BN folding (glue, plain JAX).  Weights are stored
# channels-first for matmul: (Cout, Cin).
# ----------------------------------------------------------------------------
def _fold_bn(w, b, gamma, beta, mean, var, eps=1e-5):
    scale = gamma / jnp.sqrt(var + eps)
    return w * scale[:, None], (b - mean) * scale + beta


def init_params(key, channels):
    c = channels[0]
    csum = sum(channels)
    ks = jax.random.split(key, 16)

    def conv(kw, kb, cin, cout):
        w = 0.1 * jax.random.normal(kw, (cout, cin), jnp.float32)
        b = 0.05 * jax.random.normal(kb, (cout,), jnp.float32)
        return w, b

    def bn(kg, kb, km, kv, cout):
        gamma = 1.0 + 0.1 * jax.random.normal(kg, (cout,), jnp.float32)
        beta = 0.1 * jax.random.normal(kb, (cout,), jnp.float32)
        mean = 0.1 * jax.random.normal(km, (cout,), jnp.float32)
        var = 1.0 + 0.1 * jnp.abs(jax.random.normal(kv, (cout,), jnp.float32))
        return gamma, beta, mean, var

    params = {}
    wf, bf = conv(ks[0], ks[1], csum, c)
    params["fuse"] = _fold_bn(wf, bf, *bn(ks[2], ks[3], ks[4], ks[5], c))
    for i, name in enumerate(["g", "theta", "phi"]):
        kw, kb = jax.random.split(ks[6 + i], 2)
        w, b = conv(kw, kb, c, c)
        kg, kb2, km, kv = jax.random.split(ks[9 + i], 4)
        params[name] = _fold_bn(w, b, *bn(kg, kb2, km, kv, c))
    return params


# ----------------------------------------------------------------------------
# Wrapper: bilinear upsample + concat (glue), then the two Pallas kernels.
# No transposes: NCHW -> (B, Csum, HW) and back are pure reshapes.
# ----------------------------------------------------------------------------
def nl_forward(xs, params):
    x0, x1, x2, x3 = xs
    b, c, h, w = x0.shape
    hw = h * w

    def up(x):
        # F.upsample(..., mode='bilinear', align_corners=False) equivalent
        return jax.image.resize(x, (x.shape[0], x.shape[1], h, w), "bilinear")

    xcat = jnp.concatenate([x0, up(x1), up(x2), up(x3)], axis=1)  # (B,Csum,H,W)
    csum = xcat.shape[1]
    xcat = xcat.reshape(b, csum, hw)

    vmem_limit = _vmem_limit_bytes()
    thw, hw_pad = _pick_hw_tile(hw, csum, c, vmem_limit)
    needs_mask = hw_pad != hw
    if needs_mask:
        xcat = jnp.pad(xcat, ((0, 0), (0, 0), (0, hw_pad - hw)))
    xcat = xcat.astype(jnp.bfloat16)
    n_t = hw_pad // thw

    wf, bf = params["fuse"]
    wg, bg = params["g"]
    wt, bt = params["theta"]
    wp, bp = params["phi"]

    w2 = jnp.concatenate([wg, wp], axis=0).astype(jnp.bfloat16)     # (2C, C)
    b2 = jnp.concatenate([bg, bp], axis=0).reshape(2 * c, 1)
    wf_b = wf.astype(jnp.bfloat16)
    bf_b = bf.reshape(c, 1)

    kernel_a = functools.partial(nl_project_kernel, hw=hw, thw=thw,
                                 needs_mask=needs_mask)

    # ---- kernel A: fuse + [g|phi] projection + Gram accumulator ------------
    xf_out, m_out = pl.pallas_call(
        kernel_a,
        out_shape=(jax.ShapeDtypeStruct((b, c, hw_pad), jnp.bfloat16),
                   jax.ShapeDtypeStruct((b, c, c), jnp.float32)),
        grid_spec=pltpu.PrefetchScalarGridSpec(
            num_scalar_prefetch=0,
            grid=(b, n_t),
            in_specs=[
                pl.BlockSpec((1, csum, thw), lambda i, t: (i, 0, t)),
                pl.BlockSpec((c, csum), lambda i, t: (0, 0)),
                pl.BlockSpec((c, 1), lambda i, t: (0, 0)),
                pl.BlockSpec((2 * c, c), lambda i, t: (0, 0)),
                pl.BlockSpec((2 * c, 1), lambda i, t: (0, 0)),
            ],
            out_specs=[
                pl.BlockSpec((1, c, thw), lambda i, t: (i, 0, t)),
                pl.BlockSpec((1, c, c), lambda i, t: (i, 0, 0)),   # accumulator
            ]),
        compiler_params=pltpu.CompilerParams(
            dimension_semantics=("parallel", "arbitrary"),
            vmem_limit_bytes=vmem_limit),
    )(xcat, wf_b, bf_b, w2, b2)

    # ---- theta elimination (tiny per-batch folds, exact algebra) -----------
    #   res = (M/HW) @ (W_t @ xf + b_t) + xf
    #       = ((M @ W_t)/HW) @ xf + (M @ b_t)/HW + xf
    inv_hw = 1.0 / float(hw)
    m_eff = (jnp.einsum("bij,jk->bik", m_out, wt) * inv_hw).astype(jnp.bfloat16)
    b_eff = (jnp.einsum("bij,j->bi", m_out, bt) * inv_hw)[:, :, None]  # (B,C,1)

    # ---- kernel B: streaming rank-C update + residual ----------------------
    res = pl.pallas_call(
        nl_apply_kernel,
        out_shape=jax.ShapeDtypeStruct((b, c, hw_pad), jnp.float32),
        grid_spec=pltpu.PrefetchScalarGridSpec(
            num_scalar_prefetch=0,
            grid=(b, n_t),
            in_specs=[
                pl.BlockSpec((1, c, c), lambda i, t: (i, 0, 0)),
                pl.BlockSpec((1, c, 1), lambda i, t: (i, 0, 0)),
                pl.BlockSpec((1, c, thw), lambda i, t: (i, 0, t)),
            ],
            out_specs=pl.BlockSpec((1, c, thw), lambda i, t: (i, 0, t)),
        ),
        compiler_params=pltpu.CompilerParams(
            dimension_semantics=("parallel", "parallel"),
            vmem_limit_bytes=vmem_limit),
    )(m_eff, b_eff, xf_out)

    if needs_mask:
        res = res[:, :, :hw]
    return res.reshape(b, c, h, w)


# ----------------------------------------------------------------------------
# Pure-JAX f32 reference with the ORIGINAL association (theta@phi^T/HW)@g
# ----------------------------------------------------------------------------
def nl_reference(xs, params):
    x0, x1, x2, x3 = xs
    b, c, h, w = x0.shape
    hw = h * w

    def up(x):
        return jax.image.resize(x, (x.shape[0], x.shape[1], h, w), "bilinear")

    xcat = jnp.concatenate([x0, up(x1), up(x2), up(x3)], axis=1).reshape(b, -1, hw)
    wf, bf = params["fuse"]
    wg, bg = params["g"]
    wt, bt = params["theta"]
    wp, bp = params["phi"]

    xf = jnp.maximum(jnp.einsum("oc,bch->boh", wf, xcat) + bf[None, :, None], 0.0)
    g_x = jnp.einsum("oc,bch->boh", wg, xf) + bg[None, :, None]
    th = jnp.einsum("oc,bch->boh", wt, xf) + bt[None, :, None]
    ph = jnp.einsum("oc,bch->boh", wp, xf) + bp[None, :, None]

    f = jnp.einsum("bcq,bck->bqk", th, ph) / float(hw)      # (B, HW, HW)
    res = jnp.einsum("bqk,bck->bcq", f, g_x) + xf
    return res.reshape(b, c, h, w)


if __name__ == "__main__":
    key = jax.random.PRNGKey(0)
    # Small HRNet-like config: STAGE4.NUM_CHANNELS = [4, 8, 16, 32]
    channels = [4, 8, 16, 32]
    b, h, w = 2, 16, 16
    ks = jax.random.split(key, 5)
    x0 = jax.random.normal(ks[0], (b, channels[0], h, w), jnp.float32)
    x1 = jax.random.normal(ks[1], (b, channels[1], h // 2, w // 2), jnp.float32)
    x2 = jax.random.normal(ks[2], (b, channels[2], h // 4, w // 4), jnp.float32)
    x3 = jax.random.normal(ks[3], (b, channels[3], h // 8, w // 8), jnp.float32)
    params = init_params(ks[4], channels)

    out = jax.block_until_ready(nl_forward([x0, x1, x2, x3], params))
    ref = jax.block_until_ready(nl_reference([x0, x1, x2, x3], params))

    assert out.shape == (b, channels[0], h, w)
    # bf16 MXU inputs, bf16 xf intermediate (residual) with f32 accumulation
    # -> loosened tolerance (documented ~2^-8 relative rounding on residual)
    max_err = float(jnp.max(jnp.abs(out - ref)))
    mean_err = float(jnp.mean(jnp.abs(out - ref)))
    assert max_err < 1e-1, f"max mismatch vs reference: {max_err}"
    assert mean_err < 1e-2, f"mean mismatch vs reference: {mean_err}"

    print("KERNEL_OK")
</pallas_src>

<mosaic_0001>
module attributes {stable_mosaic.version = 11 : i64} {
  func.func @nl_project_kernel(%arg0: i32, %arg1: i32, %arg2: memref<1x60x256xbf16, #tpu.memory_space<vmem>>, %arg3: memref<4x60xbf16, #tpu.memory_space<vmem>>, %arg4: memref<4x1xf32, #tpu.memory_space<vmem>>, %arg5: memref<8x4xbf16, #tpu.memory_space<vmem>>, %arg6: memref<8x1xf32, #tpu.memory_space<vmem>>, %arg7: memref<1x4x256xbf16, #tpu.memory_space<vmem>>, %arg8: memref<1x4x4xf32, #tpu.memory_space<vmem>>) attributes {dimension_semantics = [#tpu.dimension_semantics<parallel>, #tpu.dimension_semantics<arbitrary>], iteration_bounds = array<i64: 2, 1>, scalar_prefetch = 0 : i64, scratch_operands = 0 : i64, tpu.core_type = #tpu.core_type<tc>, window_params = [{transform_indices = @transform_0, window_bounds = array<i64: 1, 60, 256>}, {pipeline_mode = #tpu.pipeline_mode<synchronous>, transform_indices = @transform_1, window_bounds = array<i64: 4, 60>}, {pipeline_mode = #tpu.pipeline_mode<synchronous>, transform_indices = @transform_2, window_bounds = array<i64: 4, 1>}, {pipeline_mode = #tpu.pipeline_mode<synchronous>, transform_indices = @transform_3, window_bounds = array<i64: 8, 4>}, {pipeline_mode = #tpu.pipeline_mode<synchronous>, transform_indices = @transform_4, window_bounds = array<i64: 8, 1>}, {transform_indices = @transform_5, window_bounds = array<i64: 1, 4, 256>}, {transform_indices = @transform_6, window_bounds = array<i64: 1, 4, 4>}]} {
    %c0 = arith.constant 0 : index
    %c0_0 = arith.constant 0 : index
    %c0_1 = arith.constant 0 : index
    %0 = vector.load %arg2[%c0, %c0_0, %c0_1] : memref<1x60x256xbf16, #tpu.memory_space<vmem>>, vector<1x60x256xbf16>
    %1 = vector.shape_cast %0 : vector<1x60x256xbf16> to vector<60x256xbf16>
    %c0_2 = arith.constant 0 : index
    %c0_3 = arith.constant 0 : index
    %2 = vector.load %arg3[%c0_2, %c0_3] : memref<4x60xbf16, #tpu.memory_space<vmem>>, vector<4x60xbf16>
    %cst = arith.constant dense<0.000000e+00> : vector<4x256xf32>
    %3 = tpu.matmul %2, %1, %cst {dimension_numbers = #tpu.dot_dimension_numbers<[1], [0], [0], [1], [0, 0, 1, 1], [], []>} : vector<4x60xbf16>, vector<60x256xbf16>, vector<4x256xf32> -> vector<4x256xf32>
    %c0_4 = arith.constant 0 : index
    %c0_5 = arith.constant 0 : index
    %4 = vector.load %arg4[%c0_4, %c0_5] : memref<4x1xf32, #tpu.memory_space<vmem>>, vector<4x1xf32>
    %5 = vector.broadcast %4 : vector<4x1xf32> to vector<4x256xf32>
    %6 = arith.addf %3, %5 : vector<4x256xf32>
    %cst_6 = arith.constant 0.000000e+00 : f32
    %7 = vector.broadcast %cst_6 : f32 to vector<4x256xf32>
    %8 = arith.maximumf %6, %7 : vector<4x256xf32>
    %9 = arith.truncf %8 : vector<4x256xf32> to vector<4x256xbf16>
    %c0_7 = arith.constant 0 : index
    %c0_8 = arith.constant 0 : index
    %c0_9 = arith.constant 0 : index
    %10 = vector.load %arg7[%c0_7, %c0_8, %c0_9] : memref<1x4x256xbf16, #tpu.memory_space<vmem>>, vector<1x4x256xbf16>
    %11 = vector.shape_cast %10 : vector<1x4x256xbf16> to vector<4x256xbf16>
    %12 = vector.shape_cast %9 : vector<4x256xbf16> to vector<1x4x256xbf16>
    tpu.vector_store %arg7[%c0_7, %c0_8, %c0_9], %12 {strides = array<i32>} : memref<1x4x256xbf16, #tpu.memory_space<vmem>>, vector<1x4x256xbf16>,
    %c0_10 = arith.constant 0 : index
    %c0_11 = arith.constant 0 : index
    %13 = vector.load %arg5[%c0_10, %c0_11] : memref<8x4xbf16, #tpu.memory_space<vmem>>, vector<8x4xbf16>
    %cst_12 = arith.constant dense<0.000000e+00> : vector<8x256xf32>
    %14 = tpu.matmul %13, %9, %cst_12 {dimension_numbers = #tpu.dot_dimension_numbers<[1], [0], [0], [1], [0, 0, 1, 1], [], []>} : vector<8x4xbf16>, vector<4x256xbf16>, vector<8x256xf32> -> vector<8x256xf32>
    %c0_13 = arith.constant 0 : index
    %c0_14 = arith.constant 0 : index
    %15 = vector.load %arg6[%c0_13, %c0_14] : memref<8x1xf32, #tpu.memory_space<vmem>>, vector<8x1xf32>
    %16 = vector.broadcast %15 : vector<8x1xf32> to vector<8x256xf32>
    %17 = arith.addf %14, %16 : vector<8x256xf32>
    %18 = vector.extract_strided_slice %17 {offsets = [0, 0], sizes = [4, 256], strides = [1, 1]} : vector<8x256xf32> to vector<4x256xf32>
    %19 = vector.extract_strided_slice %17 {offsets = [4, 0], sizes = [4, 256], strides = [1, 1]} : vector<8x256xf32> to vector<4x256xf32>
    %20 = arith.truncf %18 : vector<4x256xf32> to vector<4x256xbf16>
    %21 = arith.truncf %19 : vector<4x256xf32> to vector<4x256xbf16>
    %cst_15 = arith.constant dense<0.000000e+00> : vector<4x4xf32>
    %22 = tpu.matmul %20, %21, %cst_15 {dimension_numbers = #tpu.dot_dimension_numbers<[1], [1], [0], [0], [0, 0, 1, 0], [], []>} : vector<4x256xbf16>, vector<4x256xbf16>, vector<4x4xf32> -> vector<4x4xf32>
    %c0_i32 = arith.constant 0 : i32
    %23 = arith.cmpi eq, %arg1, %c0_i32 : i32
    %24 = arith.extui %23 : i1 to i32
    %c0_i32_16 = arith.constant 0 : i32
    %25 = arith.cmpi ne, %24, %c0_i32_16 : i32
    scf.if %25 {
      %cst_23 = arith.constant 0.000000e+00 : f32
      %32 = vector.broadcast %cst_23 : f32 to vector<4x4xf32>
      %c0_24 = arith.constant 0 : index
      %c0_25 = arith.constant 0 : index
      %c0_26 = arith.constant 0 : index
      %33 = vector.load %arg8[%c0_24, %c0_25, %c0_26] : memref<1x4x4xf32, #tpu.memory_space<vmem>>, vector<1x4x4xf32>
      %34 = vector.shape_cast %33 : vector<1x4x4xf32> to vector<4x4xf32>
      %35 = vector.shape_cast %32 : vector<4x4xf32> to vector<1x4x4xf32>
      tpu.vector_store %arg8[%c0_24, %c0_25, %c0_26], %35 {strides = array<i32>} : memref<1x4x4xf32, #tpu.memory_space<vmem>>, vector<1x4x4xf32>,
    } else {
    }
    %c0_17 = arith.constant 0 : index
    %c0_18 = arith.constant 0 : index
    %c0_19 = arith.constant 0 : index
    %26 = vector.load %arg8[%c0_17, %c0_18, %c0_19] : memref<1x4x4xf32, #tpu.memory_space<vmem>>, vector<1x4x4xf32>
    %27 = vector.shape_cast %26 : vector<1x4x4xf32> to vector<4x4xf32>
    %28 = arith.addf %27, %22 : vector<4x4xf32>
    %c0_20 = arith.constant 0 : index
    %c0_21 = arith.constant 0 : index
    %c0_22 = arith.constant 0 : index
    %29 = vector.load %arg8[%c0_20, %c0_21, %c0_22] : memref<1x4x4xf32, #tpu.memory_space<vmem>>, vector<1x4x4xf32>
    %30 = vector.shape_cast %29 : vector<1x4x4xf32> to vector<4x4xf32>
    %31 = vector.shape_cast %28 : vector<4x4xf32> to vector<1x4x4xf32>
    tpu.vector_store %arg8[%c0_20, %c0_21, %c0_22], %31 {strides = array<i32>} : memref<1x4x4xf32, #tpu.memory_space<vmem>>, vector<1x4x4xf32>,
    return
  }
  func.func @transform_0(%arg0: i32, %arg1: i32) -> (i32, i32, i32) {
    %c0_i32 = arith.constant 0 : i32
    %c0_i32_0 = arith.constant 0 : i32
    return %arg0, %c0_i32, %arg1 : i32, i32, i32
  }
  func.func @transform_1(%arg0: i32, %arg1: i32) -> (i32, i32) {
    %c0_i32 = arith.constant 0 : i32
    %c0_i32_0 = arith.constant 0 : i32
    %c0_i32_1 = arith.constant 0 : i32
    return %c0_i32, %c0_i32_0 : i32, i32
  }
  func.func @transform_2(%arg0: i32, %arg1: i32) -> (i32, i32) {
    %c0_i32 = arith.constant 0 : i32
    %c0_i32_0 = arith.constant 0 : i32
    %c0_i32_1 = arith.constant 0 : i32
    return %c0_i32, %c0_i32_0 : i32, i32
  }
  func.func @transform_3(%arg0: i32, %arg1: i32) -> (i32, i32) {
    %c0_i32 = arith.constant 0 : i32
    %c0_i32_0 = arith.constant 0 : i32
    %c0_i32_1 = arith.constant 0 : i32
    return %c0_i32, %c0_i32_0 : i32, i32
  }
  func.func @transform_4(%arg0: i32, %arg1: i32) -> (i32, i32) {
    %c0_i32 = arith.constant 0 : i32
    %c0_i32_0 = arith.constant 0 : i32
    %c0_i32_1 = arith.constant 0 : i32
    return %c0_i32, %c0_i32_0 : i32, i32
  }
  func.func @transform_5(%arg0: i32, %arg1: i32) -> (i32, i32, i32) {
    %c0_i32 = arith.constant 0 : i32
    %c0_i32_0 = arith.constant 0 : i32
    return %arg0, %c0_i32, %arg1 : i32, i32, i32
  }
  func.func @transform_6(%arg0: i32, %arg1: i32) -> (i32, i32, i32) {
    %c0_i32 = arith.constant 0 : i32
    %c0_i32_0 = arith.constant 0 : i32
    %c0_i32_1 = arith.constant 0 : i32
    return %arg0, %c0_i32, %c0_i32_0 : i32, i32, i32
  }
}

</mosaic_0001>

<bundles_post_ra>
// kernel: tpu_custom_call.1
= control target key start
LH: loop header
LB: loop body
LE: loop exit
PB: predicated region body
PF: predicated region fallthrough
CT: control target
= control target key end

     0   :  { %12 = vsyncpa [#allocation3], 0  ;;  %s1099_s0 = inlined_call_operand.vmem [shape: bf16[2,60,256], index: 0, kind: input, shape index: {}]   ;;  %s1100_s1 = inlined_call_operand.vmem [shape: bf16[4,60], index: 1, kind: input, shape index: {}]   ;;  %s1101_s2 = inlined_call_operand.vmem [shape: f32[4,1], index: 2, kind: input, shape index: {}]   ;;  %s1102_s3 = inlined_call_operand.vmem [shape: bf16[8,4], index: 3, kind: input, shape index: {}]   ;;  %s1103_s4 = inlined_call_operand.vmem [shape: f32[8,1], index: 4, kind: input, shape index: {}]   ;;  %s1104_s5 = inlined_call_operand.hbm [shape: bf16[2,4,256], index: 5, kind: output, shape index: {0}]   ;;  %s1105_s6 = inlined_call_operand.hbm [shape: f32[2,4,4], index: 6, kind: output, shape index: {1}]  }
   0x1   :  { %14 = vsyncpa [#allocation3 + $0x1], 0 }
   0x2   :  { %15 = vsyncpa [#allocation5], 0 }
   0x3   :  { %17 = vsyncpa [#allocation5 + $0x1], 0  ;;  %s932_s21 = smov 0   ;;  %s934_s22 = smov 0  }
   0x4   :  { %s936_s23 = smov 0   ;;  %s938_s24 = smov 0  }
   0x5   :  { %s940_s25 = smov 0   ;;  %s942_s26 = smov 0  }
   0x6 LB: > { %s674_s27 = sadd.s32 4294967295, %s891_s26   ;;  %s675_s28 = sadd.s32 4294967294, %s891_s26   ;;  %s891_s26 = sphi %s942_s26, %s23_s26   ;;  %s887_s25 = sphi %s940_s25, %s1112_s25   ;;  %s883_s24 = sphi %s938_s24, %s1111_s24   ;;  %s879_s23 = sphi %s936_s23, %s1110_s23   ;;  %s875_s22 = sphi %s934_s22, %s1109_s22   ;;  %s871_s21 = sphi %s932_s21, %s1108_s21  }
   0x7   : > { %s35_s29 = sadd.s32 1, %s887_s25  ;;  %s156_s30 = sadd.s32 1, %s879_s23 }
   0x8   : > { %p37_p0 = scmp.ge.s32.totalorder %s35_s29, 2  ;;  %p166_p1 = scmp.ne.s32.totalorder %s879_s23, %s875_s22 }
   0x9   : > { %p167_p2 = scmp.eq.s32.totalorder %s674_s27, 1  ;;  %p172_p3 = scmp.ne.s32.totalorder %s875_s22, %s871_s21 }
   0xa   : > { %s1114_s29 = smov (%p37_p0, %s35_s29), 0  ;;  %p173_p5 = scmp.eq.s32.totalorder %s675_s28, 1 }
   0xb   : > { %p972_p4 = por %p167_p2, %p166_p1  ;;  %s151_s8 = ssub.s32 %s887_s25, %s1114_s29 }
   0xc   : > { %p678_p6 = scmp.ge.s32.totalorder %s891_s26, 1  ;;  %p154_p7 = scmp.eq.s32.totalorder %s151_s8, 0 }
   0xd   : > { %p979_p8 = por %p173_p5, %p172_p3  ;;  %p242_p9 = scmp.lt.s32.totalorder %s891_s26, 3 }
   0xe   : > { %s985_s10 = scalar_select %p154_p7, %s879_s23, %s156_s30  }
   0xf   : > { %p243_p10 = pnand %p678_p6, %p242_p9 }
  0x10   : > { %p282_p11 = scmp.lt.s32.totalorder (!%p243_p10), %s883_s24, 1  ;;  %v893_v0 = vmov (!%p243_p10), 0   ;;  %v302_v1 = vld [vmem:[%s1101_s2] sm:$0xf] (!%p243_p10)  ;;  %vm350_vm0 = vcmask (!%p243_p10), 1045504   ;;  %vm346_vm1 = vcmask (!%p243_p10), 490496  }
  0x11   : > { %246 = sbr.rel (%p243_p10) target bundleno = 723 (0x2d3), region = 40  ;;  %389 = vmatprep.mubr.bf16.mxu0 (!%p243_p10), %v893_v0  ;;  %768 = vset.pattern.permute.xlu0 (!%p243_p10), %v893_v0  ;;  %v415_v2 = vld [vmem:[%s1103_s4] sm:$0xff] (!%p243_p10)  ;;  %s1002_s28 = sand.u32 (!%p243_p10), 1, %s875_s22   ;;  %vm425_vm2 = vcmask (!%p243_p10), 1041408   ;;  %vm421_vm3 = vcmask (!%p243_p10), 31744   ;;  %vm525_vm4 = vcmask (!%p243_p10), 27648  }
  0x12   : > { %305 = vperm.xlu0 (!%p243_p10), %768, %v302_v1   ;;  %464 = vmatprep.mubr.bf16.mxu1 (!%p243_p10), %v893_v0  ;;  %v301_v12 = vld [vmem:[%s1100_s1] sm:$0x3] (!%p243_p10)  ;;  %s679_s30 = sshll.u32 (!%p243_p10), %s1002_s28, 2  ;;  %v894_v38 = vmov (!%p243_p10), 0.0   ;;  %s705_s14 = sshll.u32 (!%p243_p10), %s883_s24, 6 }
  0x13   : > { %s273_s8 = scalar_lea.vmem (!%p243_p10), [#allocation2], %s679_s30  ;;  %v414_v26 = vld [vmem:[%s1102_s3] sm:$0xf] (!%p243_p10)  ;;  %s1022_s18 = scalar_lea.hbm (!%p243_p10), %s1104_s5, %s705_s14 }
  0x14   : > { %s553_s15 = sshll.u32 (!%p243_p10), %s273_s8, 4  ;;  %s895_s27 = smov (!%p243_p10), [#allocation2]   ;;  %s554_s15 = int_to_ptr.vmem [resolvable:$true] %s553_s15 }
  0x15   : > { %s781_s20 = scalar_lea.vmem (!%p243_p10), %s554_s15, 64 }
  0x16   : > { %418 = vperm.xlu0 (!%p243_p10), %768, %v415_v2   ;;  %p782_p12 = scmp.ne.s32.totalorder (!%p243_p10), %s554_s15, %s781_s20 }
  0x18   : > { %s283_s13 = scalar_select %p282_p11, %s883_s24, 1 }
  0x19   : > { %p783_p13 = pnand %p782_p12, %p972_p4 }
  0x1a   : > { %s704_s16 = sshll.u32 %s283_s13, 6  ;;  %s1012_s13 = scalar_lea.vmem [#allocation4], %s679_s30 }
  0x1b   : > { %s289_s19 = scalar_lea.vmem %s1099_s0, %s704_s16  ;;  %526 = vst.msk [vmem:[%s1012_s13] sm:$0xf] %vm525_vm4, %v894_v38  ;;  %p784_p0 = pneg %p783_p13 }
  0x1c   : > { %v769_v3 = vld [vmem:[%s289_s19 + $0x4] ss:$8 sps:$4 sm:$0xff]   ;;  %v771_v4 = vld [vmem:[%s289_s19] ss:$8 sps:$4 sm:$0xff]   ;;  %v772_v5 = vld [vmem:[%s289_s19 + $0x14] ss:$8 sps:$4 sm:$0xff]  }
  0x1d   : > { %357 = vmatprep.subr.bf16.mxu0 %v769_v3  ;;  %v774_v6 = vld [vmem:[%s289_s19 + $0x10] ss:$8 sps:$4 sm:$0xff]   ;;  %v775_v7 = vld [vmem:[%s289_s19 + $0x24] ss:$8 sps:$4 sm:$0xff]   ;;  %v777_v8 = vld [vmem:[%s289_s19 + $0x20] ss:$8 sps:$4 sm:$0xff]  }
  0x1e   : > { %358 = vmatpush1.bf16.msra.mxu0 %v771_v4  ;;  %v778_v9 = vld [vmem:[%s289_s19 + $0x34] ss:$8 sps:$4 sm:$0x3f]   ;;  %v780_v10 = vld [vmem:[%s289_s19 + $0x30] ss:$8 sps:$4 sm:$0x3f]  }
  0x1f   : > { %359 = vmatprep.subr.bf16.mxu0 %v772_v5  ;;  %v352_v11 = vsel %vm350_vm0, %v780_v10, 0  ;;  %s532_s19 = scalar_lea.sflag [#allocation3], %s1002_s28  ;;  %s785_s30 = sshll.u32 %s895_s27, 4  ;;  %s786_s30 = int_to_ptr.vmem [resolvable:$false] %s785_s30 }
  0x20   : > { %s787_s11 = scalar_lea.vmem %s786_s30, 128  ;;  %p788_p1 = scmp.lt.s32.totalorder %s554_s15, %s786_s30 }
  0x21   : > { %p789_p2 = scmp.lt.s32.totalorder %s787_s11, %s781_s20 }
  0x22   : > { %360 = vmatpush1.bf16.msra.mxu0 %v774_v6 }
  0x23   : > { %361 = vmatprep.subr.bf16.mxu0 %v775_v7  ;;  %p790_p3 = por %p789_p2, %p788_p1 }
  0x25   : > { %p791_p5 = pnand %p790_p3, %p784_p0 }
  0x26   : > { %362 = vmatpush1.bf16.msra.mxu0 %v777_v8 }
  0x27   : > { %691 = vmatprep.subr.msk.bf16.mxu0 %vm350_vm0, %v778_v9 }
  0x2a   : > { %364 = vmatpush1.bf16.msra.mxu0 %v352_v11 }
  0x2d   : > { %692 = vmatmul.mubr.msk.bf16.vlgmr.msra.gmra.mrb[0].mxu0 %vm346_vm1, %v301_v12 }
  0x91   : > { %v306_v13 = vpop.permute.xlu0 %305 }
  0x95   : > { %v419_v27 = vpop.permute.xlu0 %418 }
 0x100   : > { %v391_v14 = vpop.f32.mrb[0].mxu0 }
 0x101   : > { %v392_v15 = vadd.f32 %v391_v14, %v306_v13  ;;  %v393_v16 = vpop.f32.mrb[1].mxu0 }
 0x102   : > { %v394_v17 = vadd.f32 %v393_v16, %v306_v13  ;;  %v395_v18 = vpop.f32.mrb[2].mxu0 }
 0x103   : > { %v398_v19 = vmax.f32 %v392_v15, 0.0  ;;  %v396_v20 = vpop.f32.mrb[3].mxu0 }
 0x104   : > { %v399_v21 = vmax.f32 %v394_v17, 0.0 }
 0x105   : > { %v400_v22 = vpack.c.bf16 %v398_v19, %v398_v19 }
 0x106   : > { %v693_v23 = vpack.c.bf16 %v399_v21, %v398_v19  ;;  %v401_v24 = vpack.c.bf16 %v399_v21, %v399_v21 }
 0x107   : > { %v427_v25 = vsel %vm425_vm2, %v400_v22, 0 }
 0x108   : > { %695 = vmatprep.subr.msk.bf16.mxu1 %vm425_vm2, %v401_v24  ;;  %694 = vst.sshfl [vmem:[%s273_s8] sm:$0x33 pattern:$0x76325410] %v693_v23 }
 0x109   : > { %433 = vmatpush1.bf16.msra.mxu1 %v427_v25 }
 0x10c   : > { %696 = vmatmul.mubr.msk.bf16.vlgmr.msra.gmra.mrb[0].mxu1 %vm421_vm3, %v414_v26 }
 0x1df   : > { %v466_v28 = vpop.f32.mrb[0].mxu1 }
 0x1e0   : > { %v467_v29 = vadd.f32 %v466_v28, %v419_v27  ;;  %v468_v30 = vpop.f32.mrb[1].mxu1 }
 0x1e1   : > { %v469_v31 = vadd.f32 %v468_v30, %v419_v27  ;;  %v470_v32 = vpop.f32.mrb[2].mxu1 }
 0x1e2   : > { %v473_v33 = vpack.c.bf16 %v467_v29, %v467_v29  ;;  %v471_v34 = vpop.f32.mrb[3].mxu1 }
 0x1e3   : > { %v474_v35 = vpack.c.bf16 %v469_v31, %v469_v31 }
 0x1e4   : > { %v477_v37 = vrot.slane %v473_v33, 2 }
 0x1e5   : > { %v478_v36 = vrot.slane %v474_v35, 2  ;;  %513 = vmatprep.mubr.bf16.mxu1 %v474_v35 }
 0x1e7   : > { %481 = vmatprep.subr.bf16.mxu1 %v478_v36 }
 0x1e8   : > { %482 = vmatpush1.bf16.xpose.msra.mxu1 %v477_v37 }
 0x1ef   : > { %514 = vmatmul.mubr.bf16.vlgmr.msra.gmra.mrb[4].mxu1 %v473_v33 }
 0x1f0   : > { %794 = shalt.err (!%p791_p5)
}
 0x1f1   : > { %s795_s8 = scalar_lea.hbm %s1022_s18, 64  ;;  %s799_s17 = scalar_lea.hbm %s1104_s5, 128 }
 0x1f2   : > { %p796_p6 = scmp.ne.s32.totalorder %s1022_s18, %s795_s8  ;;  %p800_p10 = scmp.lt.u32.totalorder %s1022_s18, %s1104_s5 }
 0x1f3   : > { %p801_p11 = scmp.lt.u32.totalorder %s799_s17, %s795_s8  ;;  %p803_p13 = scmp.lt.u32.totalorder %s795_s8, %s1022_s18 }
 0x1f4   : > { %p797_p7 = pnand %p796_p6, %p972_p4 }
 0x1f5   : > { %p802_p12 = por %p801_p11, %p800_p10 }
 0x1f6   : > { %p798_p9 = pneg %p797_p7 }
 0x1f7   : > { %p804_p0 = por %p803_p13, %p802_p12 }
 0x1f9   : > { %p805_p1 = pnand %p804_p0, %p798_p9 }
 0x1fb   : > { %808 = shalt.err (!%p805_p1)
}
 0x1fc   : > { %706 = dma.vmem_to_hbm [thread:$0]  (%p972_p4), %s554_s15, 64, %s1022_s18, %s532_s19   ;;  %v527_v39 = vld [vmem:[%s1012_s13] sm:$0xf] }
 0x1fd   : > { %s566_s20 = sshll.u32 %s1012_s13, 4  ;;  %s1049_s12 = scalar_lea.hbm %s1105_s6, %s705_s14  ;;  %s1051_s20 = int_to_ptr.vmem [resolvable:$true] %s566_s20 }
 0x1fe   : > { %s537_s15 = scalar_lea.sflag [#allocation5], %s1002_s28  ;;  %s809_s18 = scalar_lea.vmem %s1051_s20, 64 }
 0x1ff   : > { %p810_p2 = scmp.ne.s32.totalorder %s1051_s20, %s809_s18  ;;  %s896_s24 = smov [#allocation4]  }
 0x200   : > { %s813_s19 = sshll.u32 %s896_s24, 4  ;;  %s814_s19 = int_to_ptr.vmem [resolvable:$false] %s813_s19 }
 0x201   : > { %p811_p3 = pnand %p810_p2, %p972_p4  ;;  %s815_s14 = scalar_lea.vmem %s814_s19, 128 }
 0x202   : > { %p816_p6 = scmp.lt.s32.totalorder %s1051_s20, %s814_s19  ;;  %p817_p7 = scmp.lt.s32.totalorder %s815_s14, %s809_s18 }
 0x203   : > { %p812_p5 = pneg %p811_p3 }
 0x204   : > { %p818_p9 = por %p817_p7, %p816_p6 }
 0x206   : > { %p819_p10 = pnand %p818_p9, %p812_p5 }
 0x2c2   : > { %v515_v40 = vpop.f32.mrb[4].mxu1 }
 0x2c3   : > { %v528_v41 = vadd.f32 %v527_v39, %v515_v40  ;;  %v517_v42 = vpop.f32.mrb[5].mxu1 }
 0x2c4   : > { %v518_v43 = vpop.f32.mrb[6].mxu1 }
 0x2c5   : > { %530 = vst.msk [vmem:[%s1012_s13] sm:$0xf] %vm525_vm4, %v528_v41  ;;  %v519_v44 = vpop.f32.mrb[7].mxu1 }
 0x2c6   : > { %822 = shalt.err (!%p819_p10)
}
 0x2c7   : > { %s823_s28 = scalar_lea.hbm %s1049_s12, 64  ;;  %s827_s17 = scalar_lea.hbm %s1105_s6, 128 }
 0x2c8   : > { %p824_p11 = scmp.ne.s32.totalorder %s1049_s12, %s823_s28  ;;  %p828_p0 = scmp.lt.u32.totalorder %s1049_s12, %s1105_s6 }
 0x2c9   : > { %p829_p1 = scmp.lt.u32.totalorder %s827_s17, %s823_s28  ;;  %p831_p3 = scmp.lt.u32.totalorder %s823_s28, %s1049_s12 }
 0x2ca   : > { %p825_p12 = pnand %p824_p11, %p972_p4 }
 0x2cb   : > { %p830_p2 = por %p829_p1, %p828_p0 }
 0x2cc   : > { %p826_p13 = pneg %p825_p12 }
 0x2cd   : > { %p832_p5 = por %p831_p3, %p830_p2 }
 0x2cf   : > { %p833_p6 = pnand %p832_p5, %p826_p13 }
 0x2d1   : > { %836 = shalt.err (!%p833_p6)
}
 0x2d2   : > { %707 = dma.vmem_to_hbm [thread:$0]  (%p972_p4), %s1051_s20, 64, %s1049_s12, %s537_s15  }
 0x2d3 PF: > { %p717_p7 = scmp.ge.s32.totalorder %s891_s26, 2  ;;  %s578_s11 = sand.u32 1, %s871_s21  }
 0x2d4   : > { %s579_s8 = scalar_lea.sflag [#allocation3], %s578_s11 }
 0x2d5   : > { %p711_p9 = pnand %p717_p7, %p979_p8 }
 0x2d7   : > { %862 = dma.done.wait (!%p711_p9), %s579_s8, 64  }
 0x2d8   : > { %864 = vsyncadd (!%p711_p9), %s579_s8, 4294967232  ;;  %s588_s18 = scalar_lea.sflag [#allocation5], %s578_s11 }
 0x2d9   : > { %866 = dma.done.wait (!%p711_p9), %s588_s18, 64  }
 0x2da   : > { %868 = vsyncadd (!%p711_p9), %s588_s18, 4294967232  ;;  %s23_s26 = sadd.s32 1, %s891_s26   ;;  %s1108_s21 = smov %s875_s22 }
 0x2db   : > { %p20_p10 = scmp.ge.s32.totalorder %s23_s26, 4   ;;  %s1109_s22 = smov %s879_s23 }
 0x2dc   : > { %s1110_s23 = smov %s985_s10  ;;  %s1111_s24 = smov %s887_s25 }
 0x2dd   : > { %s1112_s25 = smov %s1114_s29  ;;  %22 = sbr.rel (!%p20_p10) target bundleno = 6 (0x6), region = 96 }
 0x2e4   :  { %593 = vsyncpa [#allocation3], 1 }
 0x2e5   :  { %595 = vsyncpa [#allocation3 + $0x1], 1 }
 0x2e6   :  { %596 = vsyncpa [#allocation5], 1 }
 0x2e7   :  { %598 = vsyncpa [#allocation5 + $0x1], 1 }

</bundles_post_ra>
